<compile_context>
chip_gen: v7x
topology: tpu7x:2x2x1
jax: 0.10.0
libtpu: 0.0.40
codegen_flags: <defaults>
</compile_context>

<pallas_src>
import math

import jax
import jax.numpy as jnp
from jax import lax
from jax.experimental import pallas as pl
from jax.experimental.pallas import tpu as pltpu


def _round_up(x, m):
    return ((x + m - 1) // m) * m


def _choose_tiles(n_rows, d_pad):
    """Pick (row_tile, col_tile, padded_row_count)."""
    if n_rows <= 256:
        t = _round_up(n_rows, 8)
        if t > 128:
            t = _round_up(t, 128)     # keep 128-lane accumulator groups clean
        return t, t, t
    t_c = 256                          # streamed column tile
    n_pad = _round_up(n_rows, t_c)
    t_r = t_c
    budget = 40 * 1024 * 1024          # fits v7x's 64 MiB VMEM with headroom
    for cand in (512, 1024, 2048):
        blk = 2 * cand * d_pad * 2 + 2 * t_c * d_pad * 2 + cand * 128 * 4
        # keep >= 2 row tiles so megacore (v7x) can shard the parallel axis
        if n_pad % cand == 0 and n_pad // cand >= 2 and blk <= budget:
            t_r = cand
    return t_r, t_c, n_pad


def _make_ntxent_kernel(t_r, t_c, n_valid, shift_c):
    """Tiled NTXent denominator kernel (tau shift / sizes are static)."""
    lane = t_c if t_c < 128 else 128
    assert t_c % lane == 0
    n_groups = t_c // lane

    def kernel(zr_ref, zc_ref, out_ref, acc_ref):
        j = pl.program_id(1)

        @pl.when(j == 0)
        def _():
            acc_ref[...] = jnp.zeros_like(acc_ref)

        # MXU: (T_r, D) x (T_c, D)^T, bf16 feed, f32 accumulation.
        # Inputs are pre-normalized and pre-scaled by 1/sqrt(tau), so s == sim/tau.
        s = lax.dot_general(zr_ref[...], zc_ref[...],
                            (((1,), (1,)), ((), ())),
                            preferred_element_type=jnp.float32)      # (T_r, T_c)

        # Exact in-tile masking of the self-diagonal and of zero-padded columns.
        grow = pl.program_id(0) * t_r + lax.broadcasted_iota(jnp.int32, (t_r, t_c), 0)
        gcol = j * t_c + lax.broadcasted_iota(jnp.int32, (t_r, t_c), 1)
        kill = (grow == gcol) | (gcol >= n_valid)
        e = jnp.where(kill, 0.0, jnp.exp(s - shift_c))               # overflow-safe

        # Lane-dense accumulation: only VPU adds in the hot loop (no per-step XLU).
        part = e[:, 0:lane]
        for g in range(1, n_groups):
            part = part + e[:, g * lane:(g + 1) * lane]
        acc_ref[...] += part

        @pl.when(j == pl.num_programs(1) - 1)
        def _():
            # Single cross-lane reduce per row tile.
            out_ref[...] = jnp.sum(acc_ref[...], axis=1, keepdims=True)

    return kernel, lane


def ntxent_pallas(e_i, e_j, tau: float = 1.0):
    """NTXent loss via a grid-tiled Pallas kernel (never materializes (2B,2B))."""
    assert e_i.shape == e_j.shape and e_i.ndim == 2
    B, D = e_i.shape
    N = 2 * B
    c = 1.0 / float(tau)               # shift: sim/tau <= 1/tau  =>  exp arg <= 0
    alpha = float(tau) ** -0.5         # fold temperature: (a*zi)·(a*zj) = sim/tau

    # One-shot f32 L2 normalization + temperature fold (hoisted out of kernel).
    z = jnp.concatenate([e_i, e_j], axis=0).astype(jnp.float32)      # (N, D)
    nrm = jnp.sqrt(jnp.sum(z * z, axis=1, keepdims=True))
    zn = z / jnp.maximum(nrm, 1e-12)
    zs = (zn * alpha).astype(jnp.bfloat16)                           # bf16 MXU feed

    # positives / tau : one (B,)-sized row-wise dot, trivial in XLA.
    pos_over_tau = jnp.sum(zn[:B] * zn[B:], axis=1) / float(tau)
    pos_over_tau = jnp.concatenate([pos_over_tau, pos_over_tau])     # (N,)

    D_pad = _round_up(D, 128)
    T_r, T_c, N_pad = _choose_tiles(N, D_pad)
    z_pad = jnp.pad(zs, ((0, N_pad - N), (0, D_pad - D)))            # (N_pad, D_pad)

    kernel, lane = _make_ntxent_kernel(T_r, T_c, N, c)

    # VMEM budget derived from the actual double-buffered block sizes.
    need = (2 * T_r * D_pad * 2        # resident row block (bf16, double-buffered)
            + 2 * T_c * D_pad * 2      # streamed col block (bf16, double-buffered)
            + T_r * lane * 4           # lane-dense accumulator scratch
            + 2 * T_r * 4)             # output block
    vmem_limit = int(min(48 * 2**20, max(16 * 2**20, 2 * need)))

    denom_shifted = pl.pallas_call(
        kernel,
        out_shape=jax.ShapeDtypeStruct((N_pad, 1), jnp.float32),
        grid_spec=pltpu.PrefetchScalarGridSpec(
            num_scalar_prefetch=0,
            grid=(N_pad // T_r, N_pad // T_c),
            in_specs=[
                # resident row block: constant across j
                pl.BlockSpec((T_r, D_pad), lambda i, j: (i, 0)),
                # streamed column block: advances with j (double-buffered)
                pl.BlockSpec((T_c, D_pad), lambda i, j: (j, 0)),
            ],
            out_specs=pl.BlockSpec((T_r, 1), lambda i, j: (i, 0)),
            scratch_shapes=[pltpu.VMEM((T_r, lane), jnp.float32)],
        ),
        compiler_params=pltpu.CompilerParams(
            dimension_semantics=("parallel", "arbitrary"),
            vmem_limit_bytes=vmem_limit,
        ),
    )(z_pad, z_pad)[:, 0]

    # per-row loss: log(sum_{m != k} exp(sim/tau)) - pos/tau  (shift c restored).
    per_row = jnp.log(denom_shifted[:N]) + c - pos_over_tau
    return jnp.sum(per_row) / (2.0 * B)


def ntxent_ref(e_i, e_j, tau: float = 1.0):
    """Pure-JAX reference mirroring the PyTorch forward pass."""
    def l2norm(x):
        n = jnp.sqrt(jnp.sum(x * x, axis=1, keepdims=True))
        return x / jnp.maximum(n, 1e-12)

    B = e_i.shape[0]
    zi, zj = l2norm(e_i), l2norm(e_j)
    z = jnp.concatenate([zi, zj], axis=0)
    sim = z @ z.T
    pos = jnp.concatenate([jnp.diagonal(sim, B), jnp.diagonal(sim, -B)], axis=0)
    neg = 1.0 - jnp.eye(2 * B, dtype=jnp.float32)
    denom = jnp.sum(neg * jnp.exp(sim / tau), axis=1)
    return jnp.sum(-jnp.log(jnp.exp(pos / tau) / denom)) / (2.0 * B)


if __name__ == "__main__":
    # Module __init__(batch_size, device, tau) has no learned parameters;
    # tau is a deterministic constant set here.
    batch_size = 4
    dim = 32
    tau = 0.5

    key = jax.random.PRNGKey(0)
    k1, k2 = jax.random.split(key)
    e_i = jax.random.normal(k1, (batch_size, dim), dtype=jnp.float32)
    e_j = jax.random.normal(k2, (batch_size, dim), dtype=jnp.float32)

    loss = ntxent_pallas(e_i, e_j, tau=tau)
    jax.block_until_ready(loss)

    loss_ref = ntxent_ref(e_i, e_j, tau=tau)
    # bf16 MXU similarity => ~1e-3-level sim error; tolerance loosened accordingly.
    assert jnp.allclose(loss, loss_ref, atol=2e-2, rtol=2e-2), (loss, loss_ref)

    print("KERNEL_OK")
</pallas_src>

<mosaic_0001>
module attributes {stable_mosaic.version = 11 : i64} {
  func.func @kernel(%arg0: i32, %arg1: i32, %arg2: memref<8x128xbf16, #tpu.memory_space<vmem>>, %arg3: memref<8x128xbf16, #tpu.memory_space<vmem>>, %arg4: memref<8x1xf32, #tpu.memory_space<vmem>>, %arg5: memref<8x8xf32, #tpu.memory_space<vmem>>) attributes {dimension_semantics = [#tpu.dimension_semantics<parallel>, #tpu.dimension_semantics<arbitrary>], iteration_bounds = array<i64: 1, 1>, scalar_prefetch = 0 : i64, scratch_operands = 1 : i64, tpu.core_type = #tpu.core_type<tc>, window_params = [{transform_indices = @transform_0, window_bounds = array<i64: 8, 128>}, {transform_indices = @transform_1, window_bounds = array<i64: 8, 128>}, {transform_indices = @transform_2, window_bounds = array<i64: 8, 1>}]} {
    %c0_i32 = arith.constant 0 : i32
    %0 = arith.cmpi eq, %arg1, %c0_i32 : i32
    %1 = arith.extui %0 : i1 to i32
    %c0_i32_0 = arith.constant 0 : i32
    %2 = arith.cmpi ne, %1, %c0_i32_0 : i32
    scf.if %2 {
      %cst_14 = arith.constant 0.000000e+00 : f32
      %29 = vector.broadcast %cst_14 : f32 to vector<8x8xf32>
      %c0_15 = arith.constant 0 : index
      %c0_16 = arith.constant 0 : index
      %30 = vector.load %arg5[%c0_15, %c0_16] : memref<8x8xf32, #tpu.memory_space<vmem>>, vector<8x8xf32>
      tpu.vector_store %arg5[%c0_15, %c0_16], %29 {strides = array<i32>} : memref<8x8xf32, #tpu.memory_space<vmem>>, vector<8x8xf32>,
    } else {
    }
    %c0 = arith.constant 0 : index
    %c0_1 = arith.constant 0 : index
    %3 = vector.load %arg2[%c0, %c0_1] : memref<8x128xbf16, #tpu.memory_space<vmem>>, vector<8x128xbf16>
    %c0_2 = arith.constant 0 : index
    %c0_3 = arith.constant 0 : index
    %4 = vector.load %arg3[%c0_2, %c0_3] : memref<8x128xbf16, #tpu.memory_space<vmem>>, vector<8x128xbf16>
    %cst = arith.constant dense<0.000000e+00> : vector<8x8xf32>
    %5 = tpu.matmul %3, %4, %cst {dimension_numbers = #tpu.dot_dimension_numbers<[1], [1], [0], [0], [0, 0, 1, 0], [], []>} : vector<8x128xbf16>, vector<8x128xbf16>, vector<8x8xf32> -> vector<8x8xf32>
    %c8_i32 = arith.constant 8 : i32
    %6 = arith.muli %arg0, %c8_i32 : i32
    %7 = tpu.iota {dimensions = array<i32: 0>} : vector<8x8xi32>
    %8 = vector.broadcast %6 : i32 to vector<8x8xi32>
    %9 = arith.addi %8, %7 : vector<8x8xi32>
    %c8_i32_4 = arith.constant 8 : i32
    %10 = arith.muli %arg1, %c8_i32_4 : i32
    %11 = tpu.iota {dimensions = array<i32: 1>} : vector<8x8xi32>
    %12 = vector.broadcast %10 : i32 to vector<8x8xi32>
    %13 = arith.addi %12, %11 : vector<8x8xi32>
    %14 = arith.cmpi eq, %9, %13 : vector<8x8xi32>
    %c8_i32_5 = arith.constant 8 : i32
    %15 = vector.broadcast %c8_i32_5 : i32 to vector<8x8xi32>
    %16 = arith.cmpi sge, %13, %15 : vector<8x8xi32>
    %17 = arith.ori %14, %16 : vector<8x8xi1>
    %cst_6 = arith.constant 2.000000e+00 : f32
    %18 = vector.broadcast %cst_6 : f32 to vector<8x8xf32>
    %19 = arith.subf %5, %18 : vector<8x8xf32>
    %20 = math.exp %19 : vector<8x8xf32>
    %cst_7 = arith.constant 0.000000e+00 : f32
    %21 = vector.broadcast %cst_7 : f32 to vector<8x8xf32>
    %22 = arith.select %17, %21, %20 : vector<8x8xi1>, vector<8x8xf32>
    %c0_8 = arith.constant 0 : index
    %c0_9 = arith.constant 0 : index
    %23 = vector.load %arg5[%c0_8, %c0_9] : memref<8x8xf32, #tpu.memory_space<vmem>>, vector<8x8xf32>
    %24 = arith.addf %23, %22 : vector<8x8xf32>
    %c0_10 = arith.constant 0 : index
    %c0_11 = arith.constant 0 : index
    %25 = vector.load %arg5[%c0_10, %c0_11] : memref<8x8xf32, #tpu.memory_space<vmem>>, vector<8x8xf32>
    tpu.vector_store %arg5[%c0_10, %c0_11], %24 {strides = array<i32>} : memref<8x8xf32, #tpu.memory_space<vmem>>, vector<8x8xf32>,
    %c0_i32_12 = arith.constant 0 : i32
    %26 = arith.cmpi eq, %arg1, %c0_i32_12 : i32
    %27 = arith.extui %26 : i1 to i32
    %c0_i32_13 = arith.constant 0 : i32
    %28 = arith.cmpi ne, %27, %c0_i32_13 : i32
    scf.if %28 {
      %c0_14 = arith.constant 0 : index
      %c0_15 = arith.constant 0 : index
      %29 = vector.load %arg5[%c0_14, %c0_15] : memref<8x8xf32, #tpu.memory_space<vmem>>, vector<8x8xf32>
      %cst_16 = arith.constant dense<0.000000e+00> : vector<8xf32>
      %30 = vector.multi_reduction <add>, %29, %cst_16 [1] : vector<8x8xf32> to vector<8xf32>
      %31 = vector.shape_cast %30 : vector<8xf32> to vector<8x1xf32>
      %c0_17 = arith.constant 0 : index
      %c0_18 = arith.constant 0 : index
      %32 = vector.load %arg4[%c0_17, %c0_18] : memref<8x1xf32, #tpu.memory_space<vmem>>, vector<8x1xf32>
      tpu.vector_store %arg4[%c0_17, %c0_18], %31 {strides = array<i32>} : memref<8x1xf32, #tpu.memory_space<vmem>>, vector<8x1xf32>,
    } else {
    }
    return
  }
  func.func @transform_0(%arg0: i32, %arg1: i32) -> (i32, i32) {
    %c0_i32 = arith.constant 0 : i32
    %c0_i32_0 = arith.constant 0 : i32
    return %arg0, %c0_i32 : i32, i32
  }
  func.func @transform_1(%arg0: i32, %arg1: i32) -> (i32, i32) {
    %c0_i32 = arith.constant 0 : i32
    %c0_i32_0 = arith.constant 0 : i32
    return %arg1, %c0_i32 : i32, i32
  }
  func.func @transform_2(%arg0: i32, %arg1: i32) -> (i32, i32) {
    %c0_i32 = arith.constant 0 : i32
    %c0_i32_0 = arith.constant 0 : i32
    return %arg0, %c0_i32 : i32, i32
  }
}

</mosaic_0001>

<bundles_post_ra>
// kernel: tpu_custom_call.1
= control target key start
LH: loop header
LB: loop body
LE: loop exit
PB: predicated region body
PF: predicated region fallthrough
CT: control target
= control target key end

     0   :  { %7 = vsyncpa [#allocation4], 0  ;;  %s232_s0 = inlined_call_operand.hbm [shape: bf16[8,128], index: 0, kind: input, shape index: {}]   ;;  %s233_s1 = inlined_call_operand.hbm [shape: bf16[8,128], index: 1, kind: input, shape index: {}]   ;;  %s234_s2 = inlined_call_operand.vmem [shape: f32[8,1], index: 2, kind: output, shape index: {}]  }
   0x1   :  { %8 = vsyncpa [#allocation6], 0  ;;  %s183_s9 = smov [#allocation3]   ;;  %s184_s11 = smov [#allocation5]  }
   0x2   :  { %s15_s10 = sshll.u32 %s183_s9, 4  ;;  %s25_s12 = sshll.u32 %s184_s11, 4  ;;  %s16_s10 = int_to_ptr.vmem [resolvable:$true] %s15_s10  ;;  %s26_s12 = int_to_ptr.vmem [resolvable:$true] %s25_s12 }
   0x3   :  { %s135_s15 = scalar_lea.hbm %s232_s0, 64 }
   0x4   :  { %p136_p0 = scmp.ne.s32.totalorder %s232_s0, %s135_s15  ;;  %p139_p1 = scmp.lt.u32.totalorder %s135_s15, %s232_s0 }
   0x6   :  { %p141_p2 = pnand %p139_p1, %p136_p0 }
   0x8   :  { %144 = shalt.err (!%p141_p2)
}
   0x9   :  { %s145_s20 = scalar_lea.vmem %s16_s10, 64  ;;  %p150_p4 = scmp.lt.s32.totalorder %s16_s10, %s16_s10 }
   0xa   :  { %p146_p3 = scmp.ne.s32.totalorder %s16_s10, %s145_s20  ;;  %p151_p5 = scmp.lt.s32.totalorder %s145_s20, %s145_s20 }
   0xc   :  { %p152_p6 = por %p151_p5, %p150_p4 }
   0xe   :  { %p153_p7 = pnand %p152_p6, %p146_p3 }
  0x10   :  { %156 = shalt.err (!%p153_p7)
}
  0x11   :  { %18 = dma.hbm_to_vmem [thread:$0]  %s232_s0, 64, %s16_s10, [#allocation4]  }
  0x12   :  { %s157_s25 = scalar_lea.hbm %s233_s1, 64 }
  0x13   :  { %p158_p8 = scmp.ne.s32.totalorder %s233_s1, %s157_s25  ;;  %p161_p9 = scmp.lt.u32.totalorder %s157_s25, %s233_s1 }
  0x15   :  { %p163_p10 = pnand %p161_p9, %p158_p8 }
  0x17   :  { %166 = shalt.err (!%p163_p10)
}
  0x18   :  { %s167_s30 = scalar_lea.vmem %s26_s12, 64  ;;  %p172_p12 = scmp.lt.s32.totalorder %s26_s12, %s26_s12 }
  0x19   :  { %p168_p11 = scmp.ne.s32.totalorder %s26_s12, %s167_s30  ;;  %p173_p13 = scmp.lt.s32.totalorder %s167_s30, %s167_s30 }
  0x1b   :  { %p174_p0 = por %p173_p13, %p172_p12 }
  0x1d   :  { %p175_p1 = pnand %p174_p0, %p168_p11 }
  0x1f   :  { %178 = shalt.err (!%p175_p1)
}
  0x20   :  { %28 = dma.hbm_to_vmem [thread:$0]  %s233_s1, 64, %s26_s12, [#allocation6]  }
  0x21   :  { %179 = dma.done.wait [#allocation4], 64  }
  0x22   :  { %180 = vsyncadd [#allocation4], 4294967232 }
  0x23   :  { %181 = dma.done.wait [#allocation6], 64  }
  0x24   :  { %182 = vsyncadd [#allocation6], 4294967232  ;;  %v185_v0 = vmov 0.0   ;;  %vm186_vm0 = vmmov 0   ;;  %v43_v1 = vld [vmem:[#allocation5] sm:$0xf]  ;;  %v85_v6 = vlaneseq }
  0x25   :  { %123 = vmatprep.subr.bf16.mxu0 %v185_v0  ;;  %125 = vmatprep.mubr.msk.bf16.mxu0 %vm186_vm0, %v185_v0  ;;  %v42_v2 = vld [vmem:[#allocation3] sm:$0xf]  ;;  %vm40_vm1 = vcmask 64512   ;;  %vm112_vm5 = vcmask 7168  }
  0x26   :  { %124 = vmatpush3.bf16.xpose.msra.mxu0 %v43_v1  ;;  %41 = vst.msk [vmem:[#allocation2] sm:$0xff] %vm40_vm1, %v185_v0  ;;  %v86_v10 = vshrl.u32 %v85_v6, 7  ;;  %v91_v11 = vand.u32 127, %v85_v6 }
  0x28   :  { %vm94_vm2 = vcmp.eq.s32.totalorder %v86_v10, %v91_v11  ;;  %vm95_vm3 = vcmp.ge.s32.totalorder %v91_v11, 8 }
  0x29   :  { %vm96_vm4 = vmor %vm94_vm2, %vm95_vm3 }
  0x2d   :  { %126 = vmatmul.mubr.bf16.vlgmr.msra.gmra.mrb[0].mxu0 %v42_v2  ;;  %v101_v12 = vld [vmem:[#allocation2] sm:$0xff] }
 0x100   :  { %v78_v3 = vpop.f32.mrb[0].mxu0 }
 0x101   :  { %v120_v4 = vadd.f32 -2.0, %v78_v3  ;;  %v127_v5 = vpop.f32.mrb[1].mxu0 }
 0x102   :  { %v81_v7 = vpop.f32.mrb[2].mxu0 }
 0x103   :  { %v98_v8 = vmul.f32 1.442695, %v120_v4  ;;  %v128_v9 = vpop.f32.mrb[3].mxu0 }
 0x105   :  { %133 = vpow2.f32 %v98_v8 }
 0x10f   :  { %v134_v13 = vpop.eup %133 }
 0x110   :  { %v100_v14 = vsel %vm96_vm4, 0.0, %v134_v13 }
 0x111   :  { %v102_v15 = vadd.f32 %v101_v12, %v100_v14 }
 0x113   :  { %104 = vst.msk [vmem:[#allocation2] sm:$0xff] %vm40_vm1, %v102_v15 }
 0x11a   :  { %v108_v16 = vld [vmem:[#allocation2] sm:$0xff] }
 0x11b   :  { %v109_v17 = vsel %vm40_vm1, %v108_v16, 0.0 }
 0x11c   :  { %110 = vadd.xlane.f32.xlu0 %v109_v17 }
 0x1a9   :  { %v111_v18 = vpop.xlane.xlu0 %110 }
 0x1aa   :  { %113 = vst.msk [vmem:[%s234_s2] sm:$0xff] %vm112_vm5, %v111_v18 }
 0x1ab   :  { %118 = vsyncpa [#allocation4], 1 }
 0x1ac   :  { %119 = vsyncpa [#allocation6], 1 }

</bundles_post_ra>
